<compile_context>
chip_gen: v7x
topology: tpu7x:2x2x1
jax: 0.10.0
libtpu: 0.0.40
codegen_flags: <defaults>
</compile_context>

<pallas_src>
import jax
import jax.numpy as jnp
import numpy as np
from jax.experimental import pallas as pl
from jax.experimental.pallas import tpu as pltpu

_LANES = 128  # lane width of the packed weight slab / kernel output


def _fused_kernel(x1_ref, x2_ref, c_ref, b_ref, out_ref):
    # v1 = x1 @ x2  -- original operation order, tiny 8-row LHS.
    v1 = jnp.dot(x1_ref[...], x2_ref[...], preferred_element_type=jnp.float32)
    # out = [ v1 | v1 @ W.T + bias | 0 ]  via the packed C = [ I | W.T | 0 ].
    out_ref[...] = (
        jnp.dot(v1, c_ref[...], preferred_element_type=jnp.float32) + b_ref[...]
    ).astype(out_ref.dtype)


def make_model_forward(weight, bias):
    """One-time parameter prep (hoisted out of the per-call path).

    weight: (N2, N1) torch-style Linear weight; bias: (N2,).
    Returns a jitted forward(x1, x2) -> (M, N1 + N2) float32.
    """
    n2, n1 = weight.shape
    n_out = n1 + n2
    assert n_out <= _LANES

    f32 = jnp.float32
    # C = [ I_N1 | W.T | 0 ]  (N1, 128): folds concat + linear into one dot.
    c_packed = jnp.zeros((n1, _LANES), f32)
    c_packed = c_packed.at[:, :n1].set(jnp.eye(n1, dtype=f32))
    c_packed = c_packed.at[:, n1:n_out].set(weight.astype(f32).T)
    # Bias row aligned with v2's lanes.
    b_row = jnp.zeros((1, _LANES), f32).at[0, n1:n_out].set(bias.astype(f32))

    @jax.jit
    def forward(x1, x2):
        m, k = x1.shape
        k2, n1_in = x2.shape
        assert k == k2
        assert n1_in == n1, "linear1 in_features must match v1's last dim"

        out_p = pl.pallas_call(
            _fused_kernel,
            out_shape=jax.ShapeDtypeStruct((m, _LANES), f32),
            # Tiny problem: no grid, everything resident in VMEM (< 30 KiB).
            # If M ever grows, add a grid over M with
            # dimension_semantics=("parallel",) (also engages v7x's 2nd TC).
            in_specs=[
                pl.BlockSpec(memory_space=pltpu.MemorySpace.VMEM),  # x1 (M, K)
                pl.BlockSpec(memory_space=pltpu.MemorySpace.VMEM),  # x2 (K, N1)
                pl.BlockSpec(memory_space=pltpu.MemorySpace.VMEM),  # C  (N1, 128)
                pl.BlockSpec(memory_space=pltpu.MemorySpace.VMEM),  # b  (1, 128)
            ],
            out_specs=pl.BlockSpec(memory_space=pltpu.MemorySpace.VMEM),
            cost_estimate=pl.CostEstimate(
                flops=2 * m * k * n1 + 2 * m * n1 * _LANES,
                transcendentals=0,
                bytes_accessed=4
                * (m * k + k * n1 + n1 * _LANES + _LANES + m * _LANES),
            ),
        )(x1.astype(f32), x2.astype(f32), c_packed, b_row)

        # Slice the lane-dense padded output back to the semantic columns.
        return out_p[:, :n_out]

    return forward


if __name__ == "__main__":
    key = jax.random.PRNGKey(0)
    k_x1, k_x2, k_w, k_b = jax.random.split(key, 4)

    M, K, N1, N2 = 8, 25, 25, 50  # Linear(25, 50)

    x1 = jax.random.normal(k_x1, (M, K), dtype=jnp.float32)
    x2 = jax.random.normal(k_x2, (K, N1), dtype=jnp.float32)

    # Deterministic PyTorch-style Linear(25, 50) init: U(-1/sqrt(fan_in), +).
    bound = 1.0 / (N1 ** 0.5)
    weight = jax.random.uniform(k_w, (N2, N1), jnp.float32, -bound, bound)
    bias = jax.random.uniform(k_b, (N2,), jnp.float32, -bound, bound)

    forward = make_model_forward(weight, bias)  # one-time param prep
    out = jax.block_until_ready(forward(x1, x2))

    # Reference in numpy float32 (independent of XLA matmul-precision
    # defaults), using the original operation order.
    x1_n, x2_n = np.asarray(x1), np.asarray(x2)
    w_n, b_n = np.asarray(weight), np.asarray(bias)
    v1_ref = x1_n @ x2_n
    v2_ref = v1_ref @ w_n.T + b_n
    ref = np.concatenate([v1_ref, v2_ref], axis=1)

    assert out.shape == (M, N1 + N2)
    out_n = np.asarray(out)
    max_err = float(np.max(np.abs(out_n - ref)))
    assert np.allclose(out_n, ref, atol=1e-4, rtol=1e-4), max_err

    print("KERNEL_OK")
</pallas_src>

<mosaic_0001>
module attributes {stable_mosaic.version = 11 : i64} {
  func.func @_fused_kernel(%arg0: memref<8x25xf32, #tpu.memory_space<vmem>>, %arg1: memref<25x25xf32, #tpu.memory_space<vmem>>, %arg2: memref<25x128xf32, #tpu.memory_space<vmem>>, %arg3: memref<1x128xf32, #tpu.memory_space<vmem>>, %arg4: memref<8x128xf32, #tpu.memory_space<vmem>>) attributes {dimension_semantics = [], scalar_prefetch = 0 : i64, scratch_operands = 0 : i64, tpu.core_type = #tpu.core_type<tc>} {
    %c0 = arith.constant 0 : index
    %c0_0 = arith.constant 0 : index
    %0 = vector.load %arg0[%c0, %c0_0] : memref<8x25xf32, #tpu.memory_space<vmem>>, vector<8x25xf32>
    %c0_1 = arith.constant 0 : index
    %c0_2 = arith.constant 0 : index
    %1 = vector.load %arg1[%c0_1, %c0_2] : memref<25x25xf32, #tpu.memory_space<vmem>>, vector<25x25xf32>
    %cst = arith.constant dense<0.000000e+00> : vector<8x25xf32>
    %2 = tpu.matmul %0, %1, %cst {dimension_numbers = #tpu.dot_dimension_numbers<[1], [0], [0], [1], [0, 0, 1, 1], [], []>} : vector<8x25xf32>, vector<25x25xf32>, vector<8x25xf32> -> vector<8x25xf32>
    %c0_3 = arith.constant 0 : index
    %c0_4 = arith.constant 0 : index
    %3 = vector.load %arg2[%c0_3, %c0_4] : memref<25x128xf32, #tpu.memory_space<vmem>>, vector<25x128xf32>
    %cst_5 = arith.constant dense<0.000000e+00> : vector<8x128xf32>
    %4 = tpu.matmul %2, %3, %cst_5 {dimension_numbers = #tpu.dot_dimension_numbers<[1], [0], [0], [1], [0, 0, 1, 1], [], []>} : vector<8x25xf32>, vector<25x128xf32>, vector<8x128xf32> -> vector<8x128xf32>
    %c0_6 = arith.constant 0 : index
    %c0_7 = arith.constant 0 : index
    %5 = vector.load %arg3[%c0_6, %c0_7] : memref<1x128xf32, #tpu.memory_space<vmem>>, vector<1x128xf32>
    %6 = vector.broadcast %5 : vector<1x128xf32> to vector<8x128xf32>
    %7 = arith.addf %4, %6 : vector<8x128xf32>
    %c0_8 = arith.constant 0 : index
    %c0_9 = arith.constant 0 : index
    %8 = vector.load %arg4[%c0_8, %c0_9] : memref<8x128xf32, #tpu.memory_space<vmem>>, vector<8x128xf32>
    tpu.vector_store %arg4[%c0_8, %c0_9], %7 {strides = array<i32>} : memref<8x128xf32, #tpu.memory_space<vmem>>, vector<8x128xf32>,
    return
  }
}

</mosaic_0001>

<bundles_post_ra>
// kernel: forward.1
= control target key start
LH: loop header
LB: loop body
LE: loop exit
PB: predicated region body
PF: predicated region fallthrough
CT: control target
= control target key end

     0   :  { %9 = vsyncpa [#allocation3], 0  ;;  %s491_s0 = inlined_call_operand.hbm [shape: f32[8,25], index: 0, kind: input, shape index: {}]   ;;  %s492_s1 = inlined_call_operand.hbm [shape: f32[25,25], index: 1, kind: input, shape index: {}]   ;;  %s493_s2 = inlined_call_operand.hbm [shape: f32[25,128], index: 2, kind: input, shape index: {}]   ;;  %s494_s3 = inlined_call_operand.vmem [shape: f32[1,128], index: 3, kind: input, shape index: {}]   ;;  %s495_s4 = inlined_call_operand.hbm [shape: f32[8,128], index: 4, kind: output, shape index: {}]  }
   0x1   :  { %10 = vsyncpa [#allocation6], 0 }
   0x2   :  { %11 = vsyncpa [#allocation4], 0  ;;  %s399_s15 = smov [#allocation5]   ;;  %s305_s19 = scalar_lea.hbm %s492_s1, 512 }
   0x3   :  { %s27_s16 = sshll.u32 %s399_s15, 4  ;;  %p306_p0 = scmp.ne.s32.totalorder %s492_s1, %s305_s19  ;;  %s28_s16 = int_to_ptr.vmem [resolvable:$true] %s27_s16 }
   0x4   :  { %p309_p1 = scmp.lt.u32.totalorder %s305_s19, %s492_s1 }
   0x6   :  { %p311_p2 = pnand %p309_p1, %p306_p0 }
   0x8   :  { %314 = shalt.err (!%p311_p2)
}
   0x9   :  { %s315_s24 = scalar_lea.vmem %s28_s16, 512  ;;  %p320_p4 = scmp.lt.s32.totalorder %s28_s16, %s28_s16 }
   0xa   :  { %p316_p3 = scmp.ne.s32.totalorder %s28_s16, %s315_s24  ;;  %p321_p5 = scmp.lt.s32.totalorder %s315_s24, %s315_s24 }
   0xc   :  { %p322_p6 = por %p321_p5, %p320_p4 }
   0xe   :  { %p323_p7 = pnand %p322_p6, %p316_p3 }
  0x10   :  { %326 = shalt.err (!%p323_p7)
}
  0x11   :  { %s400_s25 = smov 128   ;;  %s401_s26 = smov 8  }
  0x12   :  { %33 = dma.hbm_to_vmem [thread:$0]  %s492_s1, 512, %s28_s16, [#allocation6], %s400_s25, %s400_s25, %s401_s26  }
  0x13   :  { %s402_s29 = smov [#allocation2]   ;;  %s403_s5 = smov [#allocation7]  }
  0x14   :  { %s18_s30 = sshll.u32 %s402_s29, 4  ;;  %s39_s6 = sshll.u32 %s403_s5, 4  ;;  %s19_s30 = int_to_ptr.vmem [resolvable:$true] %s18_s30  ;;  %s40_s6 = int_to_ptr.vmem [resolvable:$true] %s39_s6 }
  0x15   :  { %s327_s9 = scalar_lea.hbm %s491_s0, 128 }
  0x16   :  { %p328_p8 = scmp.ne.s32.totalorder %s491_s0, %s327_s9  ;;  %p331_p9 = scmp.lt.u32.totalorder %s327_s9, %s491_s0 }
  0x18   :  { %p333_p10 = pnand %p331_p9, %p328_p8 }
  0x1a   :  { %336 = shalt.err (!%p333_p10)
}
  0x1b   :  { %s337_s1 = scalar_lea.vmem %s19_s30, 128  ;;  %p342_p12 = scmp.lt.s32.totalorder %s19_s30, %s19_s30 }
  0x1c   :  { %p338_p11 = scmp.ne.s32.totalorder %s19_s30, %s337_s1  ;;  %p343_p13 = scmp.lt.s32.totalorder %s337_s1, %s337_s1 }
  0x1e   :  { %p344_p0 = por %p343_p13, %p342_p12 }
  0x20   :  { %p345_p1 = pnand %p344_p0, %p338_p11 }
  0x22   :  { %348 = shalt.err (!%p345_p1)
}
  0x23   :  { %21 = dma.hbm_to_vmem [thread:$0]  %s491_s0, 128, %s19_s30, [#allocation3]  }
  0x24   :  { %s349_s18 = scalar_lea.hbm %s493_s2, 512 }
  0x25   :  { %p350_p2 = scmp.ne.s32.totalorder %s493_s2, %s349_s18  ;;  %p353_p3 = scmp.lt.u32.totalorder %s349_s18, %s493_s2 }
  0x27   :  { %p355_p4 = pnand %p353_p3, %p350_p2 }
  0x29   :  { %358 = shalt.err (!%p355_p4)
}
  0x2a   :  { %s359_s23 = scalar_lea.vmem %s40_s6, 512  ;;  %p364_p6 = scmp.lt.s32.totalorder %s40_s6, %s40_s6 }
  0x2b   :  { %p360_p5 = scmp.ne.s32.totalorder %s40_s6, %s359_s23  ;;  %p365_p7 = scmp.lt.s32.totalorder %s359_s23, %s359_s23 }
  0x2d   :  { %p366_p8 = por %p365_p7, %p364_p6 }
  0x2f   :  { %p367_p9 = pnand %p366_p8, %p360_p5 }
  0x31   :  { %370 = shalt.err (!%p367_p9)
}
  0x32   :  { %45 = dma.hbm_to_vmem [thread:$0]  %s493_s2, 512, %s40_s6, [#allocation6], %s400_s25, %s400_s25, %s401_s26  }
  0x33   :  { %393 = dma.done.wait [#allocation3], 128  }
  0x34   :  { %394 = vsyncadd [#allocation3], 4294967168 }
  0x35   :  { %395 = dma.done.wait [#allocation6], 1024  }
  0x36   :  { %396 = vsyncadd [#allocation6], 4294966272  ;;  %v404_v0 = vmov 0.0|0.0   ;;  %vm405_vm0 = vmmov 0   ;;  %v406_v1 = vmov 0.0   ;;  %v58_v2 = vld [vmem:[#allocation5] sm:$0xff] }
  0x37   :  { %281 = vmatprep.subr.bf16.mxu0 %v404_v0  ;;  %288 = vmatprep.subr.bf16.mxu1 %v404_v0  ;;  %v59_v3 = vld [vmem:[#allocation5 + $0x8] sm:$0xff]  ;;  %v60_v4 = vld [vmem:[#allocation5 + $0x10] sm:$0xff]  ;;  %v61_v6 = vld [vmem:[#allocation5 + $0x18] sm:$0x1]  ;;  %vm66_vm1 = vcmask 1040384   ;;  %vm407_vm2 = vmmov 1  }
  0x38   :  { %267 = vmatprep.mubr.msk.f32.mxu0 %vm405_vm0, %v406_v1  ;;  %278 = vmatprep.mubr.msk.f32.mxu1 %vm405_vm0, %v406_v1  ;;  %v282_v5 = vpack.c.bf16 %v59_v3, %v58_v2  ;;  %v140_v7 = vld [vmem:[#allocation7] sm:$0xff]  ;;  %v141_v8 = vld [vmem:[#allocation7 + $0x8] sm:$0xff]  ;;  %v142_v9 = vld [vmem:[#allocation7 + $0x10] sm:$0xff]  ;;  %v285_v11 = vpack.c.bf16 %v61_v6, %v60_v4  ;;  %vm62_vm4 = vcmask 203776   ;;  %s408_s26 = smov [#allocation8]  }
  0x39   :  { %v143_v10 = vld [vmem:[#allocation7 + $0x18] sm:$0x1]  ;;  %v289_v12 = vpack.c.bf16 %v141_v8, %v140_v7  ;;  %vm286_vm3 = vmpackc.low %vm66_vm1, %vm407_vm2  ;;  %s234_s27 = sshll.u32 %s408_s26, 4  ;;  %s235_s27 = int_to_ptr.vmem [resolvable:$true] %s234_s27 }
  0x3a   :  { %283 = vmatpush3.bf16.msra.mxu0 %v282_v5  ;;  %v292_v13 = vpack.c.bf16 %v143_v10, %v142_v9  ;;  %v57_v14 = vld [vmem:[#allocation2] sm:$0xff]  ;;  %s371_s28 = scalar_lea.vmem %s235_s27, 128  ;;  %p376_p11 = scmp.lt.s32.totalorder %s235_s27, %s235_s27 }
  0x3b   :  { %284 = vmatprep.subr.bf16.mxu0 %v404_v0  ;;  %290 = vmatpush3.bf16.msra.mxu1 %v289_v12  ;;  %v246_v17 = vld [vmem:[%s494_s3] ss:$0 sm:$0xff]  ;;  %p372_p10 = scmp.ne.s32.totalorder %s235_s27, %s371_s28  ;;  %p377_p12 = scmp.lt.s32.totalorder %s371_s28, %s371_s28 }
  0x3c   :  { %291 = vmatprep.subr.bf16.mxu1 %v404_v0 }
  0x3d   :  { %p378_p13 = por %p377_p12, %p376_p11 }
  0x3e   :  { %287 = vmatpush3.bf16.msk.msra.mxu0 %vm286_vm3, %v285_v11 }
  0x3f   :  { %294 = vmatpush3.bf16.msk.msra.mxu1 %vm286_vm3, %v292_v13  ;;  %p379_p0 = pnand %p378_p13, %p372_p10 }
  0x41   :  { %268 = vmatmul.mubr.msk.f32.vlgmr.msra.gmra.mrb[0].mxu0 %vm62_vm4, %v57_v14 }
 0x114   :  { %v136_v15 = vpop.f32.mrb[0].mxu0 }
 0x115   :  { %v269_v16 = vpop.f32.mrb[1].mxu0  ;;  %279 = vmatmul.mubr.msk.f32.vlgmr.msra.gmra.mrb[0].mxu1 %vm62_vm4, %v136_v15 }
 0x1e8   :  { %v223_v18 = vpop.f32.mrb[0].mxu1 }
 0x1e9   :  { %v224_v19 = vadd.f32 %v246_v17, %v223_v18  ;;  %v280_v20 = vpop.f32.mrb[1].mxu1 }
 0x1eb   :  { %227 = vst [vmem:[#allocation8] sm:$0xff] %v224_v19 }
 0x1ec   :  { %382 = shalt.err (!%p379_p0)
}
 0x1ed   :  { %s383_s5 = scalar_lea.hbm %s495_s4, 128 }
 0x1ee   :  { %p384_p1 = scmp.ne.s32.totalorder %s495_s4, %s383_s5  ;;  %p387_p2 = scmp.lt.u32.totalorder %s383_s5, %s495_s4 }
 0x1f0   :  { %p389_p3 = pnand %p387_p2, %p384_p1 }
 0x1f2   :  { %392 = shalt.err (!%p389_p3)
}
 0x1f3   :  { %237 = dma.vmem_to_hbm [thread:$0]  %s235_s27, 128, %s495_s4, [#allocation4]  }
 0x1f4   :  { %397 = dma.done.wait [#allocation4], 128  }
 0x1f5   :  { %398 = vsyncadd [#allocation4], 4294967168 }
 0x1f6   :  { %241 = vsyncpa [#allocation3], 1 }
 0x1f7   :  { %242 = vsyncpa [#allocation6], 1 }
 0x1f8   :  { %243 = vsyncpa [#allocation4], 1 }

</bundles_post_ra>
